<compile_context>
chip_gen: v7x
topology: tpu7x:2x2x1
jax: 0.10.0
libtpu: 0.0.40
codegen_flags: <defaults>
</compile_context>

<pallas_src>
import functools

import jax
import jax.numpy as jnp
from jax.experimental import pallas as pl
from jax.experimental.pallas import tpu as pltpu


# ---------------------------------------------------------------------------
# Generic tiled matmul (+bias, +ReLU) Pallas kernel: C = act(A @ B + bias)
# ---------------------------------------------------------------------------
def _matmul_kernel(a_ref, b_ref, bias_ref, o_ref, acc_ref, *, relu):
    k = pl.program_id(2)

    @pl.when(k == 0)
    def _():
        acc_ref[...] = jnp.zeros_like(acc_ref)

    acc_ref[...] += jnp.dot(a_ref[...], b_ref[...],
                            preferred_element_type=jnp.float32)

    @pl.when(k == pl.num_programs(2) - 1)
    def _():
        out = acc_ref[...] + bias_ref[...]
        if relu:
            out = jnp.maximum(out, 0.0)
        o_ref[...] = out.astype(o_ref.dtype)


def _round_up(x, m):
    return ((x + m - 1) // m) * m


def _pad2d(a, rows, cols):
    r, c = a.shape
    if r == rows and c == cols:
        return a
    return jnp.pad(a, ((0, rows - r), (0, cols - c)))


def matmul_bias_act(a, b, bias=None, *, relu=False, out_dtype=jnp.float32,
                    tm=128, tn=128, tk=128):
    """act(a @ b + bias) with a tiled, software-pipelined Pallas TPU kernel.

    a: (M, K), b: (K, N), bias: (1, N) or None.  MXU inputs are cast to bf16,
    accumulation is f32 in a VMEM scratch.  Inputs are zero-padded to tile
    multiples; the result is sliced back to (M, N).
    """
    M, K = a.shape
    K2, N = b.shape
    assert K == K2, (a.shape, b.shape)

    tm = min(tm, _round_up(M, 8))
    tn = min(tn, _round_up(N, 128))
    tk = min(tk, _round_up(K, 128))
    Mp, Np, Kp = _round_up(M, tm), _round_up(N, tn), _round_up(K, tk)

    a_p = _pad2d(a.astype(jnp.bfloat16), Mp, Kp)
    b_p = _pad2d(b.astype(jnp.bfloat16), Kp, Np)
    if bias is None:
        bias_p = jnp.zeros((1, Np), jnp.float32)
    else:
        bias_p = _pad2d(bias.astype(jnp.float32).reshape(1, N), 1, Np)

    grid = (Mp // tm, Np // tn, Kp // tk)
    cost = pl.CostEstimate(
        flops=2 * Mp * Np * Kp,
        transcendentals=0,
        bytes_accessed=(Mp * Kp + Kp * Np) * 2 + Np * 4 + Mp * Np * 4,
    )

    out = pl.pallas_call(
        functools.partial(_matmul_kernel, relu=relu),
        out_shape=jax.ShapeDtypeStruct((Mp, Np), out_dtype),
        grid_spec=pltpu.PrefetchScalarGridSpec(
            num_scalar_prefetch=0,
            grid=grid,
            in_specs=[
                pl.BlockSpec((tm, tk), lambda i, j, k: (i, k)),
                pl.BlockSpec((tk, tn), lambda i, j, k: (k, j)),
                pl.BlockSpec((1, tn), lambda i, j, k: (0, j)),
            ],
            out_specs=pl.BlockSpec((tm, tn), lambda i, j, k: (i, j)),
            scratch_shapes=[pltpu.VMEM((tm, tn), jnp.float32)],
        ),
        compiler_params=pltpu.CompilerParams(
            dimension_semantics=("parallel", "parallel", "arbitrary"),
            vmem_limit_bytes=48 * 1024 * 1024,
        ),
        cost_estimate=cost,
    )(a_p, b_p, bias_p)

    if (Mp, Np) != (M, N):
        out = out[:M, :N]
    return out


# ---------------------------------------------------------------------------
# GCNEncoder forward built from the tiled kernel
# ---------------------------------------------------------------------------
def gcn_encoder_forward(x, w_in, b_in, a_hat, w1, b1, w2, b2, pool):
    # Fold input_linear into GCNConv1's feature transform (no nonlinearity
    # in between): (x @ W_in + b_in) @ W1 == x @ (W_in @ W1) + (b_in @ W1).
    w_fused = w_in @ w1                       # (F_in, H), one-time, tiny
    b_fused = b_in @ w1                       # (1, H)

    # GCNConv1: h1 = relu(A_hat @ (x @ W_fused + b_fused) + b1)
    t1 = matmul_bias_act(x, w_fused, b_fused, out_dtype=jnp.bfloat16)
    h1 = matmul_bias_act(a_hat, t1, b1, relu=True, out_dtype=jnp.bfloat16)
    # GCNConv2: h2 = relu(A_hat @ (h1 @ W2) + b2)
    t2 = matmul_bias_act(h1, w2, out_dtype=jnp.bfloat16)
    h2 = matmul_bias_act(a_hat, t2, b2, relu=True, out_dtype=jnp.bfloat16)
    # global_mean_pool as a row-normalized one-hot matmul (rows padded to 8
    # inside matmul_bias_act for a lane/sublane-friendly store, sliced back).
    return matmul_bias_act(pool, h2, out_dtype=jnp.float32)


# ---------------------------------------------------------------------------
# JAX glue: dense normalized adjacency + pooling matrix (irregular scatters,
# built outside the kernel)
# ---------------------------------------------------------------------------
def build_gcn_adj(edge_index, edge_weight, num_nodes):
    """Dense normalized adjacency: D^{-1/2} (A + I) D^{-1/2}, A[dst, src]=w."""
    src, dst = edge_index[0], edge_index[1]
    loop = jnp.arange(num_nodes, dtype=src.dtype)
    src = jnp.concatenate([src, loop])
    dst = jnp.concatenate([dst, loop])
    w = jnp.concatenate([edge_weight, jnp.ones((num_nodes,), jnp.float32)])
    deg = jnp.zeros((num_nodes,), jnp.float32).at[dst].add(w)
    dinv = jnp.where(deg > 0, jax.lax.rsqrt(deg), 0.0)
    norm = dinv[src] * w * dinv[dst]
    a = jnp.zeros((num_nodes, num_nodes), jnp.float32).at[dst, src].add(norm)
    return a


def build_pool_matrix(batch, num_graphs):
    onehot = (batch[None, :] == jnp.arange(num_graphs)[:, None]).astype(jnp.float32)
    counts = onehot.sum(axis=1, keepdims=True)
    return onehot / jnp.maximum(counts, 1.0)


# ---------------------------------------------------------------------------
# References
# ---------------------------------------------------------------------------
def reference_f32(x, w_in, b_in, a, w1, b1, w2, b2, p):
    h0 = x @ w_in + b_in
    h1 = jnp.maximum(a @ (h0 @ w1) + b1, 0.0)
    h2 = jnp.maximum(a @ (h1 @ w2) + b2, 0.0)
    return p @ h2


def reference_bf16(x, w_in, b_in, a, w1, b1, w2, b2, p):
    """Emulates the kernel's bf16-operand / f32-accumulate pipeline exactly."""
    bf, f32 = jnp.bfloat16, jnp.float32

    def dot(u, v):
        return jnp.dot(u.astype(bf), v.astype(bf), preferred_element_type=f32)

    w_fused = w_in @ w1
    b_fused = b_in @ w1
    a_bf = a
    t1 = (dot(x, w_fused) + b_fused).astype(bf)
    h1 = jnp.maximum(dot(a_bf, t1) + b1, 0.0).astype(bf)
    t2 = dot(h1, w2).astype(bf)
    h2 = jnp.maximum(dot(a_bf, t2) + b2, 0.0).astype(bf)
    return dot(p, h2)


# ---------------------------------------------------------------------------
# main
# ---------------------------------------------------------------------------
if __name__ == "__main__":
    # Small, lane-aligned shapes consistent with the module's forward
    # (module defaults are input_dim=1280, hidden_dim=256; scaled down).
    N = 256           # total nodes (2 graphs x 128 nodes)
    INPUT_DIM = 256
    HIDDEN = 128
    E = 512           # number of directed edges
    G = 2             # graphs in the batch

    key = jax.random.PRNGKey(0)
    kx, ke1, ke2, kw, k_in, k1, k2, kb0, kb1, kb2 = jax.random.split(key, 10)

    # Graph data
    x = jax.random.normal(kx, (N, INPUT_DIM), jnp.float32)
    edge_src = jax.random.randint(ke1, (E,), 0, N)
    edge_dst = jax.random.randint(ke2, (E,), 0, N)
    edge_index = jnp.stack([edge_src, edge_dst], axis=0)               # (2, E)
    edge_weight = jax.random.uniform(kw, (E,), jnp.float32, 0.1, 1.0)
    batch = jnp.repeat(jnp.arange(G), N // G)                          # (N,)

    # Parameters (Linear weights stored transposed as (in, out))
    s_in = 1.0 / jnp.sqrt(INPUT_DIM)
    s_h = 1.0 / jnp.sqrt(HIDDEN)
    w_in = jax.random.uniform(k_in, (INPUT_DIM, HIDDEN), jnp.float32, -s_in, s_in)
    b_in = jax.random.uniform(kb0, (1, HIDDEN), jnp.float32, -s_in, s_in)
    w1 = jax.random.uniform(k1, (HIDDEN, HIDDEN), jnp.float32, -s_h, s_h)
    b1 = jax.random.uniform(kb1, (1, HIDDEN), jnp.float32, -s_h, s_h)
    w2 = jax.random.uniform(k2, (HIDDEN, HIDDEN), jnp.float32, -s_h, s_h)
    b2 = jax.random.uniform(kb2, (1, HIDDEN), jnp.float32, -s_h, s_h)

    # Glue: dense normalized adjacency + pooling matrix
    a_hat = build_gcn_adj(edge_index, edge_weight, N)
    pool = build_pool_matrix(batch, G)

    out = gcn_encoder_forward(x, w_in, b_in, a_hat, w1, b1, w2, b2, pool)
    out = jax.block_until_ready(out)

    ref_bf16 = reference_bf16(x, w_in, b_in, a_hat, w1, b1, w2, b2, pool)
    ref_f32 = reference_f32(x, w_in, b_in, a_hat, w1, b1, w2, b2, pool)

    assert out.shape == (G, HIDDEN), out.shape
    # Tight check vs. a reference that emulates the bf16/f32-accumulate path.
    assert jnp.allclose(out, ref_bf16, rtol=2e-2, atol=2e-2)
    # Loose sanity check vs. full-f32 math (bf16 operand rounding only).
    assert jnp.allclose(out, ref_f32, rtol=5e-2, atol=5e-2)

    print("KERNEL_OK")
</pallas_src>

<mosaic_0001>
module attributes {stable_mosaic.version = 11 : i64} {
  func.func @_matmul_kernel(%arg0: i32, %arg1: i32, %arg2: i32, %arg3: memref<128x128xbf16, #tpu.memory_space<vmem>>, %arg4: memref<128x128xbf16, #tpu.memory_space<vmem>>, %arg5: memref<1x128xf32, #tpu.memory_space<vmem>>, %arg6: memref<128x128xbf16, #tpu.memory_space<vmem>>, %arg7: memref<128x128xf32, #tpu.memory_space<vmem>>) attributes {dimension_semantics = [#tpu.dimension_semantics<parallel>, #tpu.dimension_semantics<parallel>, #tpu.dimension_semantics<arbitrary>], iteration_bounds = array<i64: 2, 1, 2>, scalar_prefetch = 0 : i64, scratch_operands = 1 : i64, tpu.core_type = #tpu.core_type<tc>, window_params = [{transform_indices = @transform_0, window_bounds = array<i64: 128, 128>}, {transform_indices = @transform_1, window_bounds = array<i64: 128, 128>}, {transform_indices = @transform_2, window_bounds = array<i64: 1, 128>}, {transform_indices = @transform_3, window_bounds = array<i64: 128, 128>}]} {
    %c0_i32 = arith.constant 0 : i32
    %0 = arith.cmpi eq, %arg2, %c0_i32 : i32
    %1 = arith.extui %0 : i1 to i32
    %c0_i32_0 = arith.constant 0 : i32
    %2 = arith.cmpi ne, %1, %c0_i32_0 : i32
    scf.if %2 {
      %cst_9 = arith.constant 0.000000e+00 : f32
      %12 = vector.broadcast %cst_9 : f32 to vector<128x128xf32>
      %c0_10 = arith.constant 0 : index
      %c0_11 = arith.constant 0 : index
      %13 = vector.load %arg7[%c0_10, %c0_11] : memref<128x128xf32, #tpu.memory_space<vmem>>, vector<128x128xf32>
      tpu.vector_store %arg7[%c0_10, %c0_11], %12 {strides = array<i32>} : memref<128x128xf32, #tpu.memory_space<vmem>>, vector<128x128xf32>,
    } else {
    }
    %c0 = arith.constant 0 : index
    %c0_1 = arith.constant 0 : index
    %3 = vector.load %arg7[%c0, %c0_1] : memref<128x128xf32, #tpu.memory_space<vmem>>, vector<128x128xf32>
    %c0_2 = arith.constant 0 : index
    %c0_3 = arith.constant 0 : index
    %4 = vector.load %arg3[%c0_2, %c0_3] : memref<128x128xbf16, #tpu.memory_space<vmem>>, vector<128x128xbf16>
    %c0_4 = arith.constant 0 : index
    %c0_5 = arith.constant 0 : index
    %5 = vector.load %arg4[%c0_4, %c0_5] : memref<128x128xbf16, #tpu.memory_space<vmem>>, vector<128x128xbf16>
    %cst = arith.constant dense<0.000000e+00> : vector<128x128xf32>
    %6 = tpu.matmul %4, %5, %cst {dimension_numbers = #tpu.dot_dimension_numbers<[1], [0], [0], [1], [0, 0, 1, 1], [], []>} : vector<128x128xbf16>, vector<128x128xbf16>, vector<128x128xf32> -> vector<128x128xf32>
    %7 = arith.addf %3, %6 : vector<128x128xf32>
    %c0_6 = arith.constant 0 : index
    %c0_7 = arith.constant 0 : index
    %8 = vector.load %arg7[%c0_6, %c0_7] : memref<128x128xf32, #tpu.memory_space<vmem>>, vector<128x128xf32>
    tpu.vector_store %arg7[%c0_6, %c0_7], %7 {strides = array<i32>} : memref<128x128xf32, #tpu.memory_space<vmem>>, vector<128x128xf32>,
    %c1_i32 = arith.constant 1 : i32
    %9 = arith.cmpi eq, %arg2, %c1_i32 : i32
    %10 = arith.extui %9 : i1 to i32
    %c0_i32_8 = arith.constant 0 : i32
    %11 = arith.cmpi ne, %10, %c0_i32_8 : i32
    scf.if %11 {
      %c0_9 = arith.constant 0 : index
      %c0_10 = arith.constant 0 : index
      %12 = vector.load %arg7[%c0_9, %c0_10] : memref<128x128xf32, #tpu.memory_space<vmem>>, vector<128x128xf32>
      %c0_11 = arith.constant 0 : index
      %c0_12 = arith.constant 0 : index
      %13 = vector.load %arg5[%c0_11, %c0_12] : memref<1x128xf32, #tpu.memory_space<vmem>>, vector<1x128xf32>
      %14 = vector.broadcast %13 : vector<1x128xf32> to vector<128x128xf32>
      %15 = arith.addf %12, %14 : vector<128x128xf32>
      %16 = arith.truncf %15 : vector<128x128xf32> to vector<128x128xbf16>
      %c0_13 = arith.constant 0 : index
      %c0_14 = arith.constant 0 : index
      %17 = vector.load %arg6[%c0_13, %c0_14] : memref<128x128xbf16, #tpu.memory_space<vmem>>, vector<128x128xbf16>
      tpu.vector_store %arg6[%c0_13, %c0_14], %16 {strides = array<i32>} : memref<128x128xbf16, #tpu.memory_space<vmem>>, vector<128x128xbf16>,
    } else {
    }
    return
  }
  func.func @transform_0(%arg0: i32, %arg1: i32, %arg2: i32) -> (i32, i32) {
    %c0_i32 = arith.constant 0 : i32
    return %arg0, %arg2 : i32, i32
  }
  func.func @transform_1(%arg0: i32, %arg1: i32, %arg2: i32) -> (i32, i32) {
    %c0_i32 = arith.constant 0 : i32
    return %arg2, %arg1 : i32, i32
  }
  func.func @transform_2(%arg0: i32, %arg1: i32, %arg2: i32) -> (i32, i32) {
    %c0_i32 = arith.constant 0 : i32
    %c0_i32_0 = arith.constant 0 : i32
    return %c0_i32, %arg1 : i32, i32
  }
  func.func @transform_3(%arg0: i32, %arg1: i32, %arg2: i32) -> (i32, i32) {
    %c0_i32 = arith.constant 0 : i32
    return %arg0, %arg1 : i32, i32
  }
}

</mosaic_0001>

<bundles_post_ra>
// kernel: tpu_custom_call.1
= control target key start
LH: loop header
LB: loop body
LE: loop exit
PB: predicated region body
PF: predicated region fallthrough
CT: control target
= control target key end

     0   :  { %s1795_s0 = inlined_call_operand.hbm [shape: bf16[256,256], index: 0, kind: input, shape index: {}]   ;;  %s1796_s1 = inlined_call_operand.hbm [shape: bf16[256,128], index: 1, kind: input, shape index: {}]   ;;  %s1797_s2 = inlined_call_operand.vmem [shape: f32[1,128], index: 2, kind: input, shape index: {}]   ;;  %s1798_s3 = inlined_call_operand.hbm [shape: bf16[256,128], index: 3, kind: output, shape index: {}]  }
   0x1   :  { %1810 = sst [smem:[#allocation17_spill]] %s1795_s0 }
   0x2   :  { %1811 = sst [smem:[#allocation18_spill]] %s1796_s1 }
   0x3   :  { %1812 = sst [smem:[#allocation19_spill]] %s1797_s2 }
   0x4   :  { %1813 = sst [smem:[#allocation20_spill]] %s1798_s3 }
   0x5   :  { %8 = vsyncpa [#allocation4], 0 }
   0x6   :  { %10 = vsyncpa [#allocation4 + $0x1], 0 }
   0x7   :  { %11 = vsyncpa [#allocation7], 0 }
   0x8   :  { %13 = vsyncpa [#allocation7 + $0x1], 0 }
   0x9   :  { %14 = vsyncpa [#allocation5], 0 }
   0xa   :  { %16 = vsyncpa [#allocation5 + $0x1], 0  ;;  %s1414_s12 = smov 0   ;;  %s1416_s13 = smov 0  }
   0xb   :  { %s1418_s14 = smov 0   ;;  %s1420_s15 = smov 0  }
   0xc   :  { %s1422_s16 = smov 0   ;;  %s1424_s17 = smov 0  }
   0xd   :  { %s1426_s18 = smov 0   ;;  %s1428_s19 = smov 0  }
   0xe   :  { %s1430_s20 = smov 0   ;;  %s1432_s21 = smov 0  }
   0xf   :  { %s1434_s22 = smov 0   ;;  %s1436_s23 = smov 0  }
  0x10   :  { %s1438_s24 = smov 0   ;;  %s1440_s25 = smov 0  }
  0x11 LB: > { %1814 = sst [smem:[#allocation12_spill]] %s1331_s12  ;;  %s34_s26 = sadd.s32 1, %s1375_s23  ;;  %s1383_s25 = sphi %s1440_s25, %s22_s25   ;;  %s1379_s24 = sphi %s1438_s24, %s1862_s24   ;;  %s1375_s23 = sphi %s1436_s23, %s1861_s23   ;;  %s1371_s22 = sphi %s1434_s22, %s1860_s22   ;;  %s1367_s21 = sphi %s1432_s21, %s1859_s21   ;;  %s1363_s20 = sphi %s1430_s20, %s1858_s20   ;;  %s1359_s19 = sphi %s1428_s19, %s1857_s19   ;;  %s1355_s18 = sphi %s1426_s18, %s1856_s18   ;;  %s1351_s17 = sphi %s1424_s17, %s1855_s17   ;;  %s1347_s16 = sphi %s1422_s16, %s1854_s16   ;;  %s1343_s15 = sphi %s1420_s15, %s1853_s15   ;;  %s1339_s14 = sphi %s1418_s14, %s1852_s14   ;;  %s1335_s13 = sphi %s1416_s13, %s1851_s13   ;;  %s1331_s12 = sphi %s1414_s12, %s1850_s12  }
  0x12   : > { %1815 = sst [smem:[#allocation13_spill]] %s1367_s21  ;;  %s41_s27 = sadd.s32 1, %s1379_s24 }
  0x13   : > { %1816 = sst [smem:[#allocation14_spill]] %s1371_s22  ;;  %p35_p0 = scmp.ge.s32.totalorder %s34_s26, 2 }
  0x14   : > { %s50_s28 = sadd.s32 1, %s1363_s20  ;;  %p57_p1 = scmp.ne.s32.totalorder %s1363_s20, %s1359_s19 }
  0x15   : > { %p1803_p2 = scmp.eq.s32.totalorder %s1383_s25, 0  ;;  %s1864_s26 = smov (%p35_p0, %s34_s26), 0 }
  0x16   : > { %1817 = sst [smem:[#allocation15_spill]] %s1864_s26  ;;  %s1866_s27 = smov (!%p35_p0, %s41_s27), %s1379_s24 }
  0x17   : > { %s1495_s29 = ssub.s32 %s1375_s23, %s1864_s26  ;;  %p1499_p3 = por %p1803_p2, %p57_p1 }
  0x18   : > { %p43_p4 = scmp.ge.s32.totalorder %s1866_s27, 2  ;;  %s132_s4 = sadd.s32 1, %s1339_s14 }
  0x19   : > { %p1802_p7 = scmp.lt.s32.totalorder %s1383_s25, 4  ;;  %s175_s6 = sand.u32 1, %s1363_s20  }
  0x1a   : > { %s1868_s27 = smov (%p43_p4, %s1866_s27), 0  ;;  %s839_s10 = sshll.u32 %s175_s6, 6 }
  0x1b   : > { %1819 = sst [smem:[#allocation16_spill]] %s1868_s27  ;;  %s45_s5 = ssub.s32 %s1379_s24, %s1868_s27 }
  0x1c   : > { %s47_s7 = sor.u32 %s1495_s29, %s45_s5  ;;  %p130_p8 = scmp.eq.s32.totalorder %s45_s5, 0 }
  0x1d   : > { %p48_p9 = scmp.eq.s32.totalorder %s47_s7, 0  ;;  %s890_s11 = sshll.u32 %s1379_s24, 5 }
  0x1e   : > { %s1515_s8 = scalar_select %p130_p8, %s1339_s14, %s132_s4  }
  0x1f   : > { %s1518_s9 = scalar_select %p48_p9, %s1363_s20, %s50_s28  }
  0x20   : > { %s185_s26 = sadd.s32 %s1375_s23, %s890_s11  ;;  %s179_s22 = scalar_lea.vmem [#allocation3], %s839_s10 }
  0x21   : > { %s842_s3 = sshll.u32 %s185_s26, 6  ;;  %s188_s2 = sshll.u32 %s179_s22, 4  ;;  %s1527_s2 = int_to_ptr.vmem [resolvable:$true] %s188_s2 }
  0x22   : > { %s1820_s0 = sld [smem:[#allocation17_spill]]  ;;  %p1533_p10 = pnand %p1802_p7, %p1499_p3 }
  0x23   : > { %p846_p11 = scmp.ge.s32.totalorder %s1383_s25, 1  ;;  %s1538_s22 = scalar_lea.sflag [#allocation4], %s175_s6 }
  0x24   : > { %p1175_p13 = pneg %p1533_p10 }
  0x28   : > { %s1525_s12 = scalar_lea.hbm %s1820_s0, %s842_s3  ;;  %s1178_s26 = scalar_lea.hbm %s1820_s0, 4096 }
  0x29   : > { %s1173_s1 = scalar_lea.hbm %s1525_s12, 1024  ;;  %p1179_p3 = scmp.lt.u32.totalorder %s1525_s12, %s1820_s0 }
  0x2a   : > { %p1174_p12 = scmp.ne.s32.totalorder %s1525_s12, %s1173_s1  ;;  %p1180_p4 = scmp.lt.u32.totalorder %s1178_s26, %s1173_s1 }
  0x2b   : > { %p1182_p9 = scmp.lt.u32.totalorder %s1173_s1, %s1525_s12 }
  0x2c   : > { %p1176_p0 = pnand %p1175_p13, %p1174_p12  ;;  %p1181_p8 = por %p1180_p4, %p1179_p3 }
  0x2e   : > { %p1177_p1 = pneg %p1176_p0  ;;  %p1183_p7 = por %p1182_p9, %p1181_p8 }
  0x30   : > { %p1184_p2 = pnand %p1183_p7, %p1177_p1 }
  0x32   : > { %1187 = shalt.err (!%p1184_p2)
}
  0x33   : > { %s1188_s5 = scalar_lea.vmem %s1527_s2, 1024  ;;  %s1385_s6 = smov [#allocation3]  }
  0x34   : > { %p1189_p12 = scmp.ne.s32.totalorder %s1527_s2, %s1188_s5  ;;  %s1193_s7 = sshll.u32 %s1385_s6, 4  ;;  %s1194_s7 = int_to_ptr.vmem [resolvable:$false] %s1193_s7 }
  0x35   : > { %s1195_s10 = scalar_lea.vmem %s1194_s7, 2048  ;;  %p1196_p6 = scmp.lt.s32.totalorder %s1527_s2, %s1194_s7 }
  0x36   : > { %p1191_p0 = pnand %p1189_p12, %p1175_p13  ;;  %p1197_p3 = scmp.lt.s32.totalorder %s1195_s10, %s1188_s5 }
  0x38   : > { %p1192_p5 = pneg %p1191_p0  ;;  %p1198_p4 = por %p1197_p3, %p1196_p6 }
  0x3a   : > { %p1199_p8 = pnand %p1198_p4, %p1192_p5 }
  0x3c   : > { %1202 = shalt.err (!%p1199_p8)
}
  0x3d   : > { %s1386_s11 = smov 128   ;;  %s1804_s1 = smov 64  }
  0x3e   : > { %s1805_s3 = smov 4   ;;  %s1822_s21 = sld [smem:[#allocation12_spill]] }
  0x3f   : > { %1029 = dma.hbm_to_vmem [thread:$0]  (!%p1533_p10), %s1525_s12, 1024, %s1527_s2, %s1538_s22, %s1386_s11, %s1804_s1, %s1805_s3  }
  0x40   : > { %p218_p2 = scmp.lt.s32.totalorder %s1383_s25, 5  ;;  %s834_s30 = sadd.s32 4294967295, %s1383_s25  }
  0x41   : > { %s835_s4 = sadd.s32 4294967294, %s1383_s25   ;;  %p64_p6 = scmp.eq.s32.totalorder %s834_s30, 0 }
  0x42   : > { %p1571_p5 = pnand %p846_p11, %p218_p2  ;;  %s78_s5 = sadd.s32 1, %s1351_s17 }
  0x43   : > { %p1824_p7 = scmp.eq.s32.totalorder %s1495_s29, 0  ;;  %p1825_p13 = scmp.ne.s32.totalorder %s1359_s19, %s1355_s18 }
  0x44   : > { %p85_p10 = scmp.ne.s32.totalorder %s1351_s17, %s1347_s16  ;;  %p91_p11 = scmp.ne.s32.totalorder %s1347_s16, %s1343_s15 }
  0x45   : > { %s1581_s6 = scalar_select %p1824_p7, %s1351_s17, %s78_s5  }
  0x46   : > { %p1586_p1 = por %p64_p6, %p1825_p13  ;;  %p142_p9 = scmp.ne.s32.totalorder %s1339_s14, %s1335_s13 }
  0x47   : > { %p1827_p12 = scmp.eq.s32.totalorder %s1383_s25, 0  ;;  %p143_p3 = scmp.eq.s32.totalorder %s834_s30, 3 }
  0x48   : > { %s1826_s28 = scalar_select %p1586_p1, 1, 0 }
  0x49   : > { %p87_p0 = por %p85_p10, %p1827_p12  ;;  %p1598_p4 = por %p91_p11, %p64_p6 }
  0x4a   : > { %p148_p8 = scmp.ne.s32.totalorder %s1335_s13, %s1822_s21  ;;  %p1604_p2 = por %p143_p3, %p142_p9 }
  0x4b   : > { %s1828_s2 = scalar_select %p1598_p4, 1, 0 }
  0x4c   : > { %s1829_s12 = scalar_select %p1604_p2, 1, 0 }
  0x4d   : > { %p149_p7 = scmp.eq.s32.totalorder %s835_s4, 3  ;;  %s198_s18 = sand.u32 1, %s1351_s17  }
  0x4e   : > { %s891_s29 = sshll.u32 %s1375_s23, 10  ;;  %s843_s15 = sshll.u32 %s198_s18, 6 }
  0x4f   : > { %p1610_p13 = por %p149_p7, %p148_p8  ;;  %s1831_s11 = sld [smem:[#allocation18_spill]] }
  0x50   : > { %p1832_p6 = scmp.lt.s32.totalorder %s1383_s25, 4  ;;  %s202_s4 = scalar_lea.vmem [#allocation6], %s843_s15 }
  0x51   : > { %s1830_s22 = scalar_select %p1610_p13, 1, 0 }
  0x52   : > { %p1621_p10 = pnand %p1832_p6, %p87_p0  ;;  %s210_s5 = sshll.u32 %s202_s4, 4  ;;  %s1625_s5 = int_to_ptr.vmem [resolvable:$true] %s210_s5 }
  0x53   : > { %s1627_s1 = scalar_lea.sflag [#allocation7], %s198_s18 }
  0x54   : > { %p1205_p9 = pneg %p1621_p10 }
  0x55   : > { %s1617_s30 = scalar_lea.hbm %s1831_s11, %s891_s29  ;;  %s1208_s3 = scalar_lea.hbm %s1831_s11, 2048 }
  0x56   : > { %s1203_s7 = scalar_lea.hbm %s1617_s30, 1024  ;;  %p1209_p0 = scmp.lt.u32.totalorder %s1617_s30, %s1831_s11 }
  0x57   : > { %p1204_p11 = scmp.ne.s32.totalorder %s1617_s30, %s1203_s7  ;;  %p1210_p8 = scmp.lt.u32.totalorder %s1208_s3, %s1203_s7 }
  0x58   : > { %p1212_p6 = scmp.lt.u32.totalorder %s1203_s7, %s1617_s30 }
  0x59   : > { %p1206_p12 = pnand %p1205_p9, %p1204_p11  ;;  %p1211_p7 = por %p1210_p8, %p1209_p0 }
  0x5b   : > { %p1207_p3 = pneg %p1206_p12  ;;  %p1213_p13 = por %p1212_p6, %p1211_p7 }
  0x5d   : > { %p1214_p2 = pnand %p1213_p13, %p1207_p3 }
  0x5f   : > { %1217 = shalt.err (!%p1214_p2)
}
  0x60   : > { %s1218_s18 = scalar_lea.vmem %s1625_s5, 1024  ;;  %s1389_s15 = smov [#allocation6]  }
  0x61   : > { %p1219_p11 = scmp.ne.s32.totalorder %s1625_s5, %s1218_s18  ;;  %s1223_s4 = sshll.u32 %s1389_s15, 4  ;;  %s1224_s4 = int_to_ptr.vmem [resolvable:$false] %s1223_s4 }
  0x62   : > { %s1225_s0 = scalar_lea.vmem %s1224_s4, 2048  ;;  %p1226_p1 = scmp.lt.s32.totalorder %s1625_s5, %s1224_s4 }
  0x63   : > { %p1221_p12 = pnand %p1219_p11, %p1205_p9  ;;  %p1227_p0 = scmp.lt.s32.totalorder %s1225_s0, %s1218_s18 }
  0x65   : > { %p1222_p4 = pneg %p1221_p12  ;;  %p1228_p8 = por %p1227_p0, %p1226_p1 }
  0x67   : > { %p1229_p7 = pnand %p1228_p8, %p1222_p4 }
  0x69   : > { %1232 = shalt.err (!%p1229_p7)
}
  0x6a   : > { %s1834_s27 = smov 4   ;;  %s1835_s3 = smov 64  }
  0x6b   : > { %1032 = dma.hbm_to_vmem [thread:$0]  (!%p1621_p10), %s1617_s30, 1024, %s1625_s5, %s1627_s1, %s1835_s3, %s1835_s3, %s1834_s27  }
  0x6c   : > { %222 = sbr.rel (%p1571_p5) target bundleno = 436 (0x1b4), region = 32  ;;  %s224_s7 = sand.u32 (!%p1571_p5), 1, %s1359_s19  }
  0x6d   : > { %s847_s29 = sshll.u32 (!%p1571_p5), %s224_s7, 6  ;;  %s225_s10 = scalar_lea.sflag (!%p1571_p5), [#allocation4], %s224_s7 }
  0x6e   : > { %s1661_s18 = scalar_lea.vmem (!%p1571_p5), [#allocation3], %s847_s29  ;;  %p1836_p1 = scmp.ne.s32.totalorder (!%p1571_p5), %s1826_s28, 0 }
  0x73   : > { %1318 = dma.done.wait (%p1836_p1), %s225_s10, 1024  }
  0x74   : > { %1320 = vsyncadd (%p1836_p1), %s225_s10, 4294966272  ;;  %s233_s21 = sand.u32 1, %s1347_s16   ;;  %p1837_p5 = scmp.ne.s32.totalorder %s1828_s2, 0 }
  0x75   : > { %s848_s15 = sshll.u32 %s233_s21, 6  ;;  %s234_s1 = scalar_lea.sflag [#allocation7], %s233_s21 }
  0x76   : > { %s1668_s30 = scalar_lea.vmem [#allocation6], %s848_s15 }
  0x77   : > { %1322 = dma.done.wait (%p1837_p5), %s234_s1, 1024  }
  0x78   : > { %1324 = vsyncadd (%p1837_p5), %s234_s1, 4294966272  ;;  %s265_s26 = sand.u32 1, %s1335_s13   ;;  %s1838_s28 = sld [smem:[#allocation13_spill]] }
  0x79   : > { %s849_s5 = sshll.u32 %s265_s26, 6 }
  0x7a   : > { %s1677_s4 = scalar_lea.vmem [#allocation8], %s849_s5 }
  0x7e   : > { %p850_p4 = scmp.ne.s32.totalorder %s1838_s28, 0 }
  0x7f   : > { %v1390_v0 = vmov (!%p850_p4), 0.0  }
  0x80   : > { %278 = sbr.rel (%p850_p4) target bundleno = 136 (0x88), region = 44  ;;  %279 = vst [vmem:[#allocation2] sm:$0xff] (!%p850_p4), %v1390_v0  ;;  %280 = vst [vmem:[#allocation2 + $0x8] sm:$0xff] (!%p850_p4), %v1390_v0 }
  0x81   : > { %281 = vst [vmem:[#allocation2 + $0x10] sm:$0xff] (!%p850_p4), %v1390_v0  ;;  %282 = vst [vmem:[#allocation2 + $0x18] sm:$0xff] (!%p850_p4), %v1390_v0 }
  0x82   : > { %283 = vst [vmem:[#allocation2 + $0x20] sm:$0xff] (!%p850_p4), %v1390_v0  ;;  %284 = vst [vmem:[#allocation2 + $0x28] sm:$0xff] (!%p850_p4), %v1390_v0 }
  0x83   : > { %285 = vst [vmem:[#allocation2 + $0x30] sm:$0xff] (!%p850_p4), %v1390_v0  ;;  %286 = vst [vmem:[#allocation2 + $0x38] sm:$0xff] (!%p850_p4), %v1390_v0 }
  0x84   : > { %287 = vst [vmem:[#allocation2 + $0x40] sm:$0xff] (!%p850_p4), %v1390_v0  ;;  %288 = vst [vmem:[#allocation2 + $0x48] sm:$0xff] (!%p850_p4), %v1390_v0 }
  0x85   : > { %289 = vst [vmem:[#allocation2 + $0x50] sm:$0xff] (!%p850_p4), %v1390_v0  ;;  %290 = vst [vmem:[#allocation2 + $0x58] sm:$0xff] (!%p850_p4), %v1390_v0 }
  0x86   : > { %291 = vst [vmem:[#allocation2 + $0x60] sm:$0xff] (!%p850_p4), %v1390_v0  ;;  %292 = vst [vmem:[#allocation2 + $0x68] sm:$0xff] (!%p850_p4), %v1390_v0 }
  0x87   : > { %293 = vst [vmem:[#allocation2 + $0x70] sm:$0xff] %v1390_v0  ;;  %294 = vst [vmem:[#allocation2 + $0x78] sm:$0xff] %v1390_v0 }
  0x88 PF: > { %v1157_v1 = vld [vmem:[%s1668_s30] sm:$0xff]   ;;  %v1158_v2 = vld [vmem:[%s1668_s30 + $0x8] sm:$0xff]   ;;  %v1159_v3 = vld [vmem:[%s1668_s30 + $0x10] sm:$0xff]   ;;  %s1839_s2 = sld [smem:[#allocation13_spill]] }
  0x89   : > { %972 = vmatprep.subr.bf16.mxu0 %v1157_v1  ;;  %1004 = vmatprep.subr.bf16.mxu1 %v1157_v1  ;;  %v1160_v4 = vld [vmem:[%s1668_s30 + $0x18] sm:$0xff]   ;;  %v1165_v5 = vld [vmem:[%s1661_s18] sm:$0xff]   ;;  %v1162_v8 = vld [vmem:[%s1668_s30 + $0x28] sm:$0xff]  }
  0x8a   : > { %973 = vmatpush3.bf16.msra.mxu0 %v1157_v1  ;;  %1012 = vmatpush3.bf16.msra.mxu1 %v1157_v1  ;;  %v1166_v6 = vld [vmem:[%s1661_s18 + $0x20] sm:$0xff]   ;;  %v1163_v9 = vld [vmem:[%s1668_s30 + $0x30] sm:$0xff]   ;;  %v1164_v10 = vld [vmem:[%s1668_s30 + $0x38] sm:$0xff]  }
  0x8b   : > { %974 = vmatprep.subr.bf16.mxu0 %v1158_v2  ;;  %1005 = vmatprep.subr.bf16.mxu1 %v1158_v2  ;;  %v1161_v7 = vld [vmem:[%s1668_s30 + $0x20] sm:$0xff]   ;;  %v1167_v11 = vld [vmem:[%s1661_s18 + $0x8] sm:$0xff]   ;;  %v1169_v13 = vld [vmem:[%s1661_s18 + $0x10] sm:$0xff]  }
  0x8c   : > { %988 = vmatprep.mubr.bf16.mxu0 %v1165_v5  ;;  %996 = vmatprep.mubr.bf16.mxu1 %v1166_v6  ;;  %v1168_v12 = vld [vmem:[%s1661_s18 + $0x28] sm:$0xff]   ;;  %v1170_v14 = vld [vmem:[%s1661_s18 + $0x30] sm:$0xff]   ;;  %v1171_v15 = vld [vmem:[%s1661_s18 + $0x18] sm:$0xff]  }
  0x8d   : > { %v1172_v16 = vld [vmem:[%s1661_s18 + $0x38] sm:$0xff]   ;;  %v297_v17 = vld [vmem:[#allocation2 + $0x10] sm:$0xff]  ;;  %v295_v19 = vld [vmem:[#allocation2] sm:$0xff] }
  0x8e   : > { %975 = vmatpush3.bf16.msra.mxu0 %v1158_v2  ;;  %1013 = vmatpush3.bf16.msra.mxu1 %v1158_v2  ;;  %v305_v18 = vld [vmem:[#allocation2 + $0x50] sm:$0xff]  ;;  %v303_v20 = vld [vmem:[#allocation2 + $0x40] sm:$0xff]  ;;  %v298_v23 = vld [vmem:[#allocation2 + $0x18] sm:$0xff]  ;;  %p867_p2 = scmp.ne.s32.totalorder %s1839_s2, 1 }
  0x8f   : > { %976 = vmatprep.subr.bf16.mxu0 %v1159_v3  ;;  %1006 = vmatprep.subr.bf16.mxu1 %v1159_v3  ;;  %v306_v24 = vld [vmem:[#allocation2 + $0x58] sm:$0xff]  ;;  %v296_v29 = vld [vmem:[#allocation2 + $0x8] sm:$0xff]  ;;  %v301_v41 = vld [vmem:[#allocation2 + $0x30] sm:$0xff]  ;;  %s1840_s3 = sld [smem:[#allocation19_spill]] (!%p867_p2) }
  0x90   : > { %v304_v30 = vld [vmem:[#allocation2 + $0x48] sm:$0xff]  ;;  %v309_v42 = vld [vmem:[#allocation2 + $0x70] sm:$0xff]  ;;  %v299_v43 = vld [vmem:[#allocation2 + $0x20] sm:$0xff] }
  0x91   : > { %v307_v44 = vld [vmem:[#allocation2 + $0x60] sm:$0xff]  ;;  %v302_v47 = vld [vmem:[#allocation2 + $0x38] sm:$0xff]  ;;  %v300_v53 = vld [vmem:[#allocation2 + $0x28] sm:$0xff] }
  0x92   : > { %977 = vmatpush3.bf16.msra.mxu0 %v1159_v3  ;;  %1014 = vmatpush3.bf16.msra.mxu1 %v1159_v3  ;;  %v310_v48 = vld [vmem:[#allocation2 + $0x78] sm:$0xff]  ;;  %v308_v54 = vld [vmem:[#allocation2 + $0x68] sm:$0xff] }
  0x93   : > { %978 = vmatprep.subr.bf16.mxu0 %v1160_v4  ;;  %1007 = vmatprep.subr.bf16.mxu1 %v1160_v4 }
  0x95   : > { %v868_v3 = vld [vmem:[%s1840_s3] ss:$0 sm:$0xff] (!%p867_p2) }
  0x96   : > { %979 = vmatpush3.bf16.msra.mxu0 %v1160_v4  ;;  %1015 = vmatpush3.bf16.msra.mxu1 %v1160_v4 }
  0x97   : > { %980 = vmatprep.subr.bf16.mxu0 %v1161_v7  ;;  %1008 = vmatprep.subr.bf16.mxu1 %v1161_v7 }
  0x9a   : > { %981 = vmatpush3.bf16.msra.mxu0 %v1161_v7  ;;  %1016 = vmatpush3.bf16.msra.mxu1 %v1161_v7 }
  0x9b   : > { %982 = vmatprep.subr.bf16.mxu0 %v1162_v8  ;;  %1009 = vmatprep.subr.bf16.mxu1 %v1162_v8 }
  0x9e   : > { %983 = vmatpush3.bf16.msra.mxu0 %v1162_v8  ;;  %1017 = vmatpush3.bf16.msra.mxu1 %v1162_v8 }
  0x9f   : > { %984 = vmatprep.subr.bf16.mxu0 %v1163_v9  ;;  %1010 = vmatprep.subr.bf16.mxu1 %v1163_v9 }
  0xa2   : > { %985 = vmatpush3.bf16.msra.mxu0 %v1163_v9  ;;  %1018 = vmatpush3.bf16.msra.mxu1 %v1163_v9 }
  0xa3   : > { %986 = vmatprep.subr.bf16.mxu0 %v1164_v10  ;;  %1011 = vmatprep.subr.bf16.mxu1 %v1164_v10 }
  0xa6   : > { %987 = vmatpush3.bf16.msra.mxu0 %v1164_v10  ;;  %1019 = vmatpush3.bf16.msra.mxu1 %v1164_v10 }
  0xa9   : > { %989 = vmatmul.mubr.bf16.vlgmr.msra.gmra.mrb[0].mxu0 %v1167_v11  ;;  %997 = vmatmul.mubr.bf16.vlgmr.msra.gmra.mrb[0].mxu1 %v1168_v12 }
  0xaa   : > { %992 = vmatprep.mubr.bf16.mxu0 %v1169_v13  ;;  %1000 = vmatprep.mubr.bf16.mxu1 %v1170_v14 }
  0xb1   : > { %993 = vmatmul.mubr.bf16.gmra.mrb[4].mxu0 %v1171_v15  ;;  %1001 = vmatmul.mubr.bf16.gmra.mrb[4].mxu1 %v1172_v16 }
 0x17c   : > { %v990_v21 = vpop.f32.mrb[0].mxu0  ;;  %v998_v22 = vpop.f32.mrb[0].mxu1 }
 0x17d   : > { %v538_v25 = vadd.f32 %v990_v21, %v297_v17  ;;  %v546_v26 = vadd.f32 %v998_v22, %v305_v18  ;;  %v473_v27 = vpop.f32.mrb[1].mxu0  ;;  %v505_v28 = vpop.f32.mrb[1].mxu1 }
 0x17e   : > { %v536_v31 = vadd.f32 %v473_v27, %v295_v19  ;;  %v544_v32 = vadd.f32 %v505_v28, %v303_v20  ;;  %v991_v33 = vpop.f32.mrb[2].mxu0  ;;  %v999_v34 = vpop.f32.mrb[2].mxu1 }
 0x17f   : > { %554 = vst [vmem:[#allocation2 + $0x10] sm:$0xff] %v538_v25  ;;  %562 = vst [vmem:[#allocation2 + $0x50] sm:$0xff] %v546_v26  ;;  %v539_v35 = vadd.f32 %v991_v33, %v298_v23  ;;  %v547_v36 = vadd.f32 %v999_v34, %v306_v24  ;;  %v476_v37 = vpop.f32.mrb[3].mxu0  ;;  %v508_v38 = vpop.f32.mrb[3].mxu1 }
 0x180   : > { %552 = vst [vmem:[#allocation2] sm:$0xff] %v536_v31  ;;  %560 = vst [vmem:[#allocation2 + $0x40] sm:$0xff] %v544_v32  ;;  %v537_v39 = vadd.f32 %v476_v37, %v296_v29  ;;  %v545_v40 = vadd.f32 %v508_v38, %v304_v30 }
 0x181   : > { %555 = vst [vmem:[#allocation2 + $0x18] sm:$0xff] %v539_v35  ;;  %563 = vst [vmem:[#allocation2 + $0x58] sm:$0xff] %v547_v36 }
 0x182   : > { %553 = vst [vmem:[#allocation2 + $0x8] sm:$0xff] %v537_v39  ;;  %561 = vst [vmem:[#allocation2 + $0x48] sm:$0xff] %v545_v40 }
 0x184   : > { %v994_v45 = vpop.f32.mrb[4].mxu0  ;;  %v1002_v46 = vpop.f32.mrb[4].mxu1  ;;  %571 = sbr.rel (%p867_p2) target bundleno = 408 (0x198), region = 48 }
 0x185   : > { %v542_v49 = vadd.f32 %v994_v45, %v301_v41  ;;  %v550_v50 = vadd.f32 %v1002_v46, %v309_v42  ;;  %v489_v51 = vpop.f32.mrb[5].mxu0  ;;  %v521_v52 = vpop.f32.mrb[5].mxu1 }
 0x186   : > { %v540_v55 = vadd.f32 %v489_v51, %v299_v43  ;;  %v548_v56 = vadd.f32 %v521_v52, %v307_v44  ;;  %v995_v57 = vpop.f32.mrb[6].mxu0  ;;  %v1003_v58 = vpop.f32.mrb[6].mxu1  ;;  %v574_v6 = vld [vmem:[#allocation2 + $0x10] sm:$0xff] (!%p867_p2) }
 0x187   : > { %558 = vst [vmem:[#allocation2 + $0x30] sm:$0xff] %v542_v49  ;;  %566 = vst [vmem:[#allocation2 + $0x70] sm:$0xff] %v550_v50  ;;  %v543_v59 = vadd.f32 %v995_v57, %v302_v47  ;;  %v551_v60 = vadd.f32 %v1003_v58, %v310_v48  ;;  %v492_v61 = vpop.f32.mrb[7].mxu0  ;;  %v524_v62 = vpop.f32.mrb[7].mxu1  ;;  %v572_v1 = vld [vmem:[#allocation2] sm:$0xff] (!%p867_p2)  ;;  %v597_v9 = vadd.f32 (!%p867_p2), %v868_v3, %v574_v6  ;;  %v582_v21 = vld [vmem:[#allocation2 + $0x50] sm:$0xff] (!%p867_p2) }
 0x188   : > { %556 = vst [vmem:[#allocation2 + $0x20] sm:$0xff] %v540_v55  ;;  %564 = vst [vmem:[#allocation2 + $0x60] sm:$0xff] %v548_v56  ;;  %v541_v63 = vadd.f32 %v492_v61, %v300_v53  ;;  %v549_v0 = vadd.f32 %v524_v62, %v308_v54  ;;  %v595_v4 = vadd.f32 (!%p867_p2), %v868_v3, %v572_v1  ;;  %v575_v7 = vld [vmem:[#allocation2 + $0x18] sm:$0xff] (!%p867_p2)  ;;  %v580_v19 = vld [vmem:[#allocation2 + $0x40] sm:$0xff] (!%p867_p2) }
 0x189   : > { %559 = vst [vmem:[#allocation2 + $0x38] sm:$0xff] %v543_v59  ;;  %567 = vst [vmem:[#allocation2 + $0x78] sm:$0xff] %v551_v60  ;;  %v573_v2 = vld [vmem:[#allocation2 + $0x8] sm:$0xff] (!%p867_p2)  ;;  %v598_v10 = vadd.f32 (!%p867_p2), %v868_v3, %v575_v7  ;;  %v603_v23 = vadd.f32 (!%p867_p2), %v868_v3, %v580_v19  ;;  %v583_v25 = vld [vmem:[#allocation2 + $0x58] sm:$0xff] (!%p867_p2)  ;;  %v605_v26 = vadd.f32 (!%p867_p2), %v868_v3, %v582_v21 }
 0x18a   : > { %557 = vst [vmem:[#allocation2 + $0x28] sm:$0xff] %v541_v63  ;;  %565 = vst [vmem:[#allocation2 + $0x68] sm:$0xff] %v549_v0  ;;  %v596_v5 = vadd.f32 (!%p867_p2), %v868_v3, %v573_v2  ;;  %v581_v20 = vld [vmem:[#allocation2 + $0x48] sm:$0xff] (!%p867_p2)  ;;  %v606_v31 = vadd.f32 (!%p867_p2), %v868_v3, %v583_v25 }
 0x18b   : > { %v917_v22 = vpack.c.bf16 %v598_v10, %v597_v9  ;;  %v604_v24 = vadd.f32 %v868_v3, %v581_v20 }
 0x18c   : > { %v912_v15 = vpack.c.bf16 %v596_v5, %v595_v4  ;;  %v937_v39 = vpack.c.bf16 %v606_v31, %v605_v26 }
 0x18d   : > { %949 = vst [vmem:[%s1677_s4 + $0x8] sm:$0xff] %v917_v22   ;;  %v932_v35 = vpack.c.bf16 %v604_v24, %v603_v23 }
 0x18e   : > { %v578_v13 = vld [vmem:[#allocation2 + $0x30] sm:$0xff]  ;;  %913 = vst [vmem:[%s1677_s4] sm:$0xff] %v912_v15   ;;  %953 = vst [vmem:[%s1677_s4 + $0x28] sm:$0xff] %v937_v39  }
 0x18f   : > { %v576_v8 = vld [vmem:[#allocation2 + $0x20] sm:$0xff]  ;;  %v601_v17 = vadd.f32 %v868_v3, %v578_v13  ;;  %v586_v33 = vld [vmem:[#allocation2 + $0x70] sm:$0xff]  ;;  %952 = vst [vmem:[%s1677_s4 + $0x20] sm:$0xff] %v932_v35  }
 0x190   : > { %v599_v12 = vadd.f32 %v868_v3, %v576_v8  ;;  %v579_v14 = vld [vmem:[#allocation2 + $0x38] sm:$0xff]  ;;  %v584_v27 = vld [vmem:[#allocation2 + $0x60] sm:$0xff]  ;;  %v609_v37 = vadd.f32 %v868_v3, %v586_v33 }
 0x191   : > { %v577_v11 = vld [vmem:[#allocation2 + $0x28] sm:$0xff]  ;;  %v602_v18 = vadd.f32 %v868_v3, %v579_v14  ;;  %v607_v32 = vadd.f32 %v868_v3, %v584_v27  ;;  %v587_v34 = vld [vmem:[#allocation2 + $0x78] sm:$0xff] }
 0x192   : > { %v600_v16 = vadd.f32 %v868_v3, %v577_v11  ;;  %v585_v28 = vld [vmem:[#allocation2 + $0x68] sm:$0xff]  ;;  %v610_v38 = vadd.f32 %v868_v3, %v587_v34 }
 0x193   : > { %v927_v30 = vpack.c.bf16 %v602_v18, %v601_v17  ;;  %v608_v36 = vadd.f32 %v868_v3, %v585_v28 }
 0x194   : > { %v922_v29 = vpack.c.bf16 %v600_v16, %v599_v12  ;;  %v947_v41 = vpack.c.bf16 %v610_v38, %v609_v37 }
 0x195   : > { %951 = vst [vmem:[%s1677_s4 + $0x18] sm:$0xff] %v927_v30   ;;  %v942_v40 = vpack.c.bf16 %v608_v36, %v607_v32 }
 0x196   : > { %950 = vst [vmem:[%s1677_s4 + $0x10] sm:$0xff] %v922_v29   ;;  %955 = vst [vmem:[%s1677_s4 + $0x38] sm:$0xff] %v947_v41  }
 0x197   : > { %954 = vst [vmem:[%s1677_s4 + $0x30] sm:$0xff] %v942_v40  }
 0x198 PF: > { %s1841_s7 = sld [smem:[#allocation14_spill]]  ;;  %s1842_s21 = sld [smem:[#allocation20_spill]] }
 0x199   : > { %s706_s30 = sshll.u32 %s1677_s4, 4  ;;  %s1719_s5 = scalar_lea.sflag [#allocation5], %s265_s26  ;;  %s1715_s30 = int_to_ptr.vmem [resolvable:$true] %s706_s30 }
 0x19a   : > { %s1233_s28 = scalar_lea.vmem %s1715_s30, 1024  ;;  %p1844_p10 = scmp.ne.s32.totalorder %s1829_s12, 0 }
 0x19b   : > { %p1234_p13 = scmp.ne.s32.totalorder %s1715_s30, %s1233_s28  ;;  %s1391_s2 = smov [#allocation8]  }
 0x19c   : > { %s1237_s0 = sshll.u32 %s1391_s2, 4  ;;  %s1238_s0 = int_to_ptr.vmem [resolvable:$false] %s1237_s0 }
 0x19d   : > { %p1235_p9 = pnand %p1234_p13, %p1844_p10  ;;  %s1239_s27 = scalar_lea.vmem %s1238_s0, 2048 }
 0x19e   : > { %s908_s29 = sshll.u32 %s1841_s7, 10  ;;  %s1843_s1 = smov %s1842_s21 }
 0x19f   : > { %s1712_s15 = scalar_lea.hbm %s1842_s21, %s908_s29  ;;  %p1236_p3 = pneg %p1235_p9 }
 0x1a0   : > { %p1240_p6 = scmp.lt.s32.totalorder %s1715_s30, %s1238_s0  ;;  %p1241_p11 = scmp.lt.s32.totalorder %s1239_s27, %s1233_s28 }
 0x1a2   : > { %p1242_p12 = por %p1241_p11, %p1240_p6 }
 0x1a4   : > { %p1243_p0 = pnand %p1242_p12, %p1236_p3 }
 0x1a6   : > { %1246 = shalt.err (!%p1243_p0)
}
 0x1a7   : > { %s1247_s26 = scalar_lea.hbm %s1712_s15, 1024  ;;  %s1251_s7 = scalar_lea.hbm %s1843_s1, 2048 }
 0x1a8   : > { %p1248_p8 = scmp.ne.s32.totalorder %s1712_s15, %s1247_s26  ;;  %p1252_p5 = scmp.lt.u32.totalorder %s1712_s15, %s1843_s1 }
 0x1a9   : > { %p1253_p4 = scmp.lt.u32.totalorder %s1251_s7, %s1247_s26  ;;  %p1255_p13 = scmp.lt.u32.totalorder %s1247_s26, %s1712_s15 }
 0x1aa   : > { %p1249_p7 = pnand %p1248_p8, %p1844_p10 }
 0x1ab   : > { %p1254_p2 = por %p1253_p4, %p1252_p5 }
 0x1ac   : > { %p1250_p1 = pneg %p1249_p7 }
 0x1ad   : > { %p1256_p9 = por %p1255_p13, %p1254_p2 }
 0x1af   : > { %p1257_p3 = pnand %p1256_p9, %p1250_p1 }
 0x1b1   : > { %1260 = shalt.err (!%p1257_p3)
}
 0x1b2   : > { %s1392_s18 = smov 64   ;;  %s1393_s21 = smov 4  }
 0x1b3   : > { %1024 = dma.vmem_to_hbm [thread:$0]  (%p1844_p10), %s1715_s30, 1024, %s1712_s15, %s1719_s5, %s1392_s18, %s1392_s18, %s1393_s21  }
 0x1b4 PF: > { %s1845_s28 = sld [smem:[#allocation12_spill]]  ;;  %p1038_p6 = scmp.ge.s32.totalorder %s1383_s25, 2 }
 0x1b5   : > { %p1846_p11 = scmp.ne.s32.totalorder %s1830_s22, 0 }
 0x1b7   : > { %p1034_p12 = pnand %p1038_p6, %p1846_p11 }
 0x1ba   : > { %s721_s2 = sand.u32 1, %s1845_s28  }
 0x1bb   : > { %s722_s0 = scalar_lea.sflag [#allocation5], %s721_s2 }
 0x1bc   : > { %1326 = dma.done.wait (!%p1034_p12), %s722_s0, 1024  }
 0x1bd   : > { %1328 = vsyncadd (!%p1034_p12), %s722_s0, 4294966272  ;;  %s22_s25 = sadd.s32 1, %s1383_s25   ;;  %s1848_s30 = sld [smem:[#allocation15_spill]] }
 0x1be   : > { %p1748_p0 = scmp.ge.s32.totalorder %s22_s25, 6   ;;  %s1849_s5 = sld [smem:[#allocation16_spill]] }
 0x1bf   : > { %s1850_s12 = smov %s1335_s13  ;;  %s1851_s13 = smov %s1339_s14 }
 0x1c0   : > { %s1852_s14 = smov %s1515_s8  ;;  %s1853_s15 = smov %s1347_s16 }
 0x1c1   : > { %s1854_s16 = smov %s1351_s17  ;;  %s1855_s17 = smov %s1581_s6 }
 0x1c2   : > { %s1856_s18 = smov %s1359_s19  ;;  %s1857_s19 = smov %s1363_s20 }
 0x1c3   : > { %s1858_s20 = smov %s1518_s9  ;;  %s1859_s21 = smov %s1375_s23 }
 0x1c4   : > { %s1860_s22 = smov %s1379_s24  ;;  %s1861_s23 = smov %s1848_s30 }
 0x1c5   : > { %s1862_s24 = smov %s1849_s5  ;;  %21 = sbr.rel (!%p1748_p0) target bundleno = 17 (0x11), region = 101 }
 0x1cc   :  { %727 = vsyncpa [#allocation4], 1 }
 0x1cd   :  { %729 = vsyncpa [#allocation4 + $0x1], 1 }
 0x1ce   :  { %730 = vsyncpa [#allocation7], 1 }
 0x1cf   :  { %732 = vsyncpa [#allocation7 + $0x1], 1 }
 0x1d0   :  { %733 = vsyncpa [#allocation5], 1 }
 0x1d1   :  { %735 = vsyncpa [#allocation5 + $0x1], 1 }

</bundles_post_ra>
